<compile_context>
chip_gen: v6e
topology: v6e:2x2x1
jax: 0.10.0
libtpu: 0.0.40
codegen_flags: <defaults>
</compile_context>

<pallas_src>
import functools

import jax
import jax.numpy as jnp
from jax.experimental import pallas as pl
from jax.experimental.pallas import tpu as pltpu


def _kd_loss_kernel(*refs, alpha, beta, temperature, batch, tile_b, needs_mask):
    have_teacher = (beta != 0.0)
    if have_teacher:
        logits_ref, labels_ref, teacher_ref, out_ref = refs
    else:
        logits_ref, labels_ref, out_ref = refs
        teacher_ref = None

    x = logits_ref[...].astype(jnp.float32)          # (TB, C) student logits
    tb, c = x.shape

    if needs_mask:
        row0 = pl.program_id(0) * tile_b
        rows = row0 + jax.lax.broadcasted_iota(jnp.int32, (tb, 1), 0)
        valid = (rows < batch).astype(jnp.float32)    # (TB, 1) padded-row mask
    else:
        valid = None

    # Student softmax stats (shared by CE and, at T==1, by the KL term).
    need_student = (alpha != 0.0) or (have_teacher and temperature == 1.0)
    if need_student:
        m = jnp.max(x, axis=-1, keepdims=True)        # XLU row max
        e = jnp.exp(x - m)                            # EUP exp #1
        z = jnp.sum(e, axis=-1, keepdims=True)        # XLU row sum
        logz = jnp.log(z)

    hard_sum = jnp.float32(0.0)
    if alpha != 0.0:
        labels = labels_ref[...]                      # (TB, 1) int32
        cls = jax.lax.broadcasted_iota(jnp.int32, (tb, c), 1)
        onehot = (cls == labels).astype(jnp.float32)
        picked = jnp.sum(onehot * x, axis=-1, keepdims=True)
        ce_row = (logz + m) - picked                  # (TB, 1)
        if needs_mask:
            ce_row = ce_row * valid
        hard_sum = jnp.sum(ce_row)
        # TODO(synk): no ignore_index handling (PyTorch CE defaults ignore_index=-100).

    soft_sum = jnp.float32(0.0)
    if have_teacher:
        inv_t = 1.0 / temperature
        t = teacher_ref[...].astype(jnp.float32)
        if temperature != 1.0:
            t = t * inv_t
        tm = jnp.max(t, axis=-1, keepdims=True)
        e_t = jnp.exp(t - tm)                         # the only teacher exp
        z_t = jnp.sum(e_t, axis=-1, keepdims=True)
        t_logp = (t - tm) - jnp.log(z_t)
        # exact reciprocal; approx=True would trade ~2^-12 rel-err for an EUP slot
        t_p = e_t * pl.reciprocal(z_t)

        if temperature == 1.0:
            s_logp = (x - m) - logz                   # reuse student softmax, no exp
        else:
            s = x * inv_t
            if alpha != 0.0:
                sm = m * inv_t                        # max(x/T) == max(x)/T for T>0
            else:
                sm = jnp.max(s, axis=-1, keepdims=True)
            e_s = jnp.exp(s - sm)
            z_s = jnp.sum(e_s, axis=-1, keepdims=True)
            s_logp = (s - sm) - jnp.log(z_s)

        kl_row = jnp.sum(t_p * (t_logp - s_logp), axis=-1, keepdims=True)
        if needs_mask:
            kl_row = kl_row * valid
        soft_sum = jnp.sum(kl_row)

    # Lane-dense (8,128) partial-sum block: row 0 = CE partial, row 1 = KL partial.
    sub = jax.lax.broadcasted_iota(jnp.int32, (8, 128), 0)
    out_ref[0] = (jnp.where(sub == 0, hard_sum, 0.0)
                  + jnp.where(sub == 1, soft_sum, 0.0)).astype(jnp.float32)


def distill_loss(logits, labels, teacher_logits=None, *, alpha=1.0, beta=0.0,
                 temperature=1.0, loss="forward_kld", weight_scheme="other",
                 block_rows=None):
    """Pallas implementation of DistillLoss.forward (loss='forward_kld')."""
    if loss != "forward_kld":
        # TODO(synk): reverse/symmetric KL, JS, cosine, CE, l1/l2, mmd variants.
        raise NotImplementedError(loss)
    if weight_scheme == "default":
        # TODO(synk): 'default' scheme needs the hard/soft ratio; compute outside.
        raise NotImplementedError(weight_scheme)

    batch, classes = logits.shape
    have_teacher = (beta != 0.0)
    if have_teacher and teacher_logits is None:
        raise ValueError("teacher_logits required when beta != 0")

    itemsize = jnp.dtype(logits.dtype).itemsize
    if block_rows is None:
        tb = max(8, (2 << 20) // (classes * itemsize))   # ~2 MiB input blocks
    else:
        tb = int(block_rows)
    tb = min(tb, batch)
    if tb < batch:
        sub_mult = max(8, 32 // itemsize)                # 8 f32 / 16 bf16 / 32 i8
        tb = max(sub_mult, (tb // sub_mult) * sub_mult)
    num_tiles = int(pl.cdiv(batch, tb))
    padded = num_tiles * tb

    def pad_rows(a, value):
        if padded == a.shape[0]:
            return a
        fill = jnp.full((padded - a.shape[0],) + a.shape[1:], value, a.dtype)
        return jnp.concatenate([a, fill], axis=0)

    labels2d = pad_rows(labels.astype(jnp.int32).reshape(batch, 1), -1)
    args = [pad_rows(logits, 0), labels2d]
    in_specs = [
        pl.BlockSpec((tb, classes), lambda i: (i, 0)),   # student logits
        pl.BlockSpec((tb, 1), lambda i: (i, 0)),         # labels (tiny, lane-padded)
    ]
    if have_teacher:
        args.append(pad_rows(teacher_logits, 0))
        in_specs.append(pl.BlockSpec((tb, classes), lambda i: (i, 0)))

    kernel = functools.partial(
        _kd_loss_kernel,
        alpha=float(alpha), beta=float(beta), temperature=float(temperature),
        batch=batch, tile_b=tb, needs_mask=(padded != batch))

    partials = pl.pallas_call(
        kernel,
        out_shape=jax.ShapeDtypeStruct((num_tiles, 8, 128), jnp.float32),
        grid_spec=pltpu.PrefetchScalarGridSpec(
            num_scalar_prefetch=0,
            grid=(num_tiles,),
            in_specs=in_specs,
            out_specs=pl.BlockSpec((1, 8, 128), lambda i: (i, 0, 0)),
        ),
        compiler_params=pltpu.CompilerParams(
            dimension_semantics=("parallel",)),
    )(*args)

    hard = jnp.sum(partials[:, 0, 0]) / batch
    soft = jnp.sum(partials[:, 1, 0]) / batch * (float(temperature) ** 2)
    return alpha * hard + beta * soft


def _reference(logits, labels, teacher_logits, alpha, beta, temperature):
    """Pure-JAX reference for correctness checking."""
    logits = logits.astype(jnp.float32)
    teacher_logits = teacher_logits.astype(jnp.float32)
    b = logits.shape[0]
    logp = jax.nn.log_softmax(logits, axis=-1)
    hard = -jnp.mean(jnp.take_along_axis(logp, labels[:, None], axis=-1))
    s_logp = jax.nn.log_softmax(logits / temperature, axis=-1)
    t_logp = jax.nn.log_softmax(teacher_logits / temperature, axis=-1)
    t_p = jnp.exp(t_logp)
    soft = jnp.sum(t_p * (t_logp - s_logp)) / b * (temperature ** 2)
    return alpha * hard + beta * soft


if __name__ == "__main__":
    key = jax.random.PRNGKey(0)
    k1, k2, k3, k4 = jax.random.split(key, 4)

    B, C = 8, 128
    logits = jax.random.normal(k1, (B, C), dtype=jnp.float32)
    teacher = jax.random.normal(k2, (B, C), dtype=jnp.float32)
    labels = jax.random.randint(k3, (B,), 0, C, dtype=jnp.int32)

    # 1) module defaults: alpha=1, beta=0, T=1 -> CE only, teacher never DMA'd.
    out = distill_loss(logits, labels, teacher)
    jax.block_until_ready(out)
    ref = _reference(logits, labels, teacher, 1.0, 0.0, 1.0)
    assert jnp.allclose(out, ref, atol=1e-5, rtol=1e-5), (out, ref)

    # 2) KD path, T != 1.
    out = distill_loss(logits, labels, teacher, alpha=0.7, beta=0.3, temperature=2.0)
    jax.block_until_ready(out)
    ref = _reference(logits, labels, teacher, 0.7, 0.3, 2.0)
    assert jnp.allclose(out, ref, atol=1e-5, rtol=1e-5), (out, ref)

    # 3) KD path, T == 1 (student-softmax reuse branch).
    out = distill_loss(logits, labels, teacher, alpha=0.5, beta=0.5, temperature=1.0)
    jax.block_until_ready(out)
    ref = _reference(logits, labels, teacher, 0.5, 0.5, 1.0)
    assert jnp.allclose(out, ref, atol=1e-5, rtol=1e-5), (out, ref)

    # 4) multi-tile grid + ragged batch (padding/masking + 'parallel' axis).
    B2 = 20
    logits2 = jax.random.normal(k4, (B2, C), dtype=jnp.float32)
    teacher2 = jax.random.normal(k2, (B2, C), dtype=jnp.float32)
    labels2 = jax.random.randint(k3, (B2,), 0, C, dtype=jnp.int32)
    out = distill_loss(logits2, labels2, teacher2, alpha=0.7, beta=0.3,
                       temperature=2.0, block_rows=8)
    jax.block_until_ready(out)
    ref = _reference(logits2, labels2, teacher2, 0.7, 0.3, 2.0)
    assert jnp.allclose(out, ref, atol=1e-5, rtol=1e-5), (out, ref)

    # 5) bf16 inputs straight into the kernel (halves HBM traffic).
    out = distill_loss(logits.astype(jnp.bfloat16), labels,
                       teacher.astype(jnp.bfloat16),
                       alpha=0.7, beta=0.3, temperature=2.0)
    jax.block_until_ready(out)
    ref = _reference(logits.astype(jnp.bfloat16), labels,
                     teacher.astype(jnp.bfloat16), 0.7, 0.3, 2.0)
    assert jnp.allclose(out, ref, atol=1e-4, rtol=1e-4), (out, ref)

    print("KERNEL_OK")
</pallas_src>

<mosaic_0001>
module attributes {stable_mosaic.version = 11 : i64} {
  func.func @_kd_loss_kernel(%arg0: i32, %arg1: memref<8x128xf32, #tpu.memory_space<vmem>>, %arg2: memref<8x1xi32, #tpu.memory_space<vmem>>, %arg3: memref<1x8x128xf32, #tpu.memory_space<vmem>>) attributes {dimension_semantics = [#tpu.dimension_semantics<parallel>], iteration_bounds = array<i64: 1>, scalar_prefetch = 0 : i64, scratch_operands = 0 : i64, tpu.core_type = #tpu.core_type<tc>, window_params = [{transform_indices = @transform_0, window_bounds = array<i64: 8, 128>}, {transform_indices = @transform_1, window_bounds = array<i64: 8, 1>}, {transform_indices = @transform_2, window_bounds = array<i64: 1, 8, 128>}]} {
    %c0 = arith.constant 0 : index
    %c0_0 = arith.constant 0 : index
    %0 = vector.load %arg1[%c0, %c0_0] : memref<8x128xf32, #tpu.memory_space<vmem>>, vector<8x128xf32>
    %cst = arith.constant dense<0xFF800000> : vector<8xf32>
    %1 = vector.multi_reduction <maximumf>, %0, %cst [1] : vector<8x128xf32> to vector<8xf32>
    %2 = vector.shape_cast %1 : vector<8xf32> to vector<8x1xf32>
    %3 = vector.broadcast %2 : vector<8x1xf32> to vector<8x128xf32>
    %4 = arith.subf %0, %3 : vector<8x128xf32>
    %5 = math.exp %4 : vector<8x128xf32>
    %cst_1 = arith.constant dense<0.000000e+00> : vector<8xf32>
    %6 = vector.multi_reduction <add>, %5, %cst_1 [1] : vector<8x128xf32> to vector<8xf32>
    %7 = vector.shape_cast %6 : vector<8xf32> to vector<8x1xf32>
    %8 = math.log %7 : vector<8x1xf32>
    %c0_2 = arith.constant 0 : index
    %c0_3 = arith.constant 0 : index
    %9 = vector.load %arg2[%c0_2, %c0_3] : memref<8x1xi32, #tpu.memory_space<vmem>>, vector<8x1xi32>
    %10 = tpu.iota {dimensions = array<i32: 1>} : vector<8x128xi32>
    %11 = vector.broadcast %9 : vector<8x1xi32> to vector<8x128xi32>
    %12 = arith.cmpi eq, %10, %11 : vector<8x128xi32>
    %13 = arith.extui %12 : vector<8x128xi1> to vector<8x128xi32>
    %14 = arith.sitofp %13 : vector<8x128xi32> to vector<8x128xf32>
    %15 = arith.mulf %14, %0 : vector<8x128xf32>
    %cst_4 = arith.constant dense<0.000000e+00> : vector<8xf32>
    %16 = vector.multi_reduction <add>, %15, %cst_4 [1] : vector<8x128xf32> to vector<8xf32>
    %17 = vector.shape_cast %16 : vector<8xf32> to vector<8x1xf32>
    %18 = arith.addf %8, %2 : vector<8x1xf32>
    %19 = arith.subf %18, %17 : vector<8x1xf32>
    %20 = vector.shape_cast %19 : vector<8x1xf32> to vector<1x8x1xf32>
    %cst_5 = arith.constant dense<0.000000e+00> : vector<1xf32>
    %21 = vector.multi_reduction <add>, %20, %cst_5 [1, 2] : vector<1x8x1xf32> to vector<1xf32>
    %22 = vector.shape_cast %21 : vector<1xf32> to vector<1x1x1xf32>
    %23 = vector.extract %22[0, 0, 0] : f32 from vector<1x1x1xf32>
    %24 = tpu.iota {dimensions = array<i32: 0>} : vector<8x128xi32>
    %c0_i32 = arith.constant 0 : i32
    %25 = vector.broadcast %c0_i32 : i32 to vector<8x128xi32>
    %26 = arith.cmpi eq, %24, %25 : vector<8x128xi32>
    %cst_6 = arith.constant 0.000000e+00 : f32
    %27 = vector.broadcast %23 : f32 to vector<8x128xf32>
    %28 = vector.broadcast %cst_6 : f32 to vector<8x128xf32>
    %29 = arith.select %26, %27, %28 : vector<8x128xi1>, vector<8x128xf32>
    %c1_i32 = arith.constant 1 : i32
    %30 = vector.broadcast %c1_i32 : i32 to vector<8x128xi32>
    %31 = arith.cmpi eq, %24, %30 : vector<8x128xi32>
    %cst_7 = arith.constant 0.000000e+00 : f32
    %cst_8 = arith.constant 0.000000e+00 : f32
    %32 = vector.broadcast %cst_7 : f32 to vector<8x128xf32>
    %33 = vector.broadcast %cst_8 : f32 to vector<8x128xf32>
    %34 = arith.select %31, %32, %33 : vector<8x128xi1>, vector<8x128xf32>
    %35 = arith.addf %29, %34 : vector<8x128xf32>
    %c0_9 = arith.constant 0 : index
    %c0_10 = arith.constant 0 : index
    %c0_11 = arith.constant 0 : index
    %36 = vector.load %arg3[%c0_9, %c0_10, %c0_11] : memref<1x8x128xf32, #tpu.memory_space<vmem>>, vector<1x8x128xf32>
    %37 = vector.shape_cast %36 : vector<1x8x128xf32> to vector<8x128xf32>
    %38 = vector.shape_cast %35 : vector<8x128xf32> to vector<1x8x128xf32>
    tpu.vector_store %arg3[%c0_9, %c0_10, %c0_11], %38 {strides = array<i32>} : memref<1x8x128xf32, #tpu.memory_space<vmem>>, vector<1x8x128xf32>,
    return
  }
  func.func @transform_0(%arg0: i32) -> (i32, i32) {
    %c0_i32 = arith.constant 0 : i32
    %c0_i32_0 = arith.constant 0 : i32
    return %arg0, %c0_i32 : i32, i32
  }
  func.func @transform_1(%arg0: i32) -> (i32, i32) {
    %c0_i32 = arith.constant 0 : i32
    %c0_i32_0 = arith.constant 0 : i32
    return %arg0, %c0_i32 : i32, i32
  }
  func.func @transform_2(%arg0: i32) -> (i32, i32, i32) {
    %c0_i32 = arith.constant 0 : i32
    %c0_i32_0 = arith.constant 0 : i32
    %c0_i32_1 = arith.constant 0 : i32
    return %arg0, %c0_i32, %c0_i32_0 : i32, i32, i32
  }
}

</mosaic_0001>

<bundles_post_ra>
// kernel: tpu_custom_call.1
= control target key start
LH: loop header
LB: loop body
LE: loop exit
PB: predicated region body
PF: predicated region fallthrough
CT: control target
= control target key end

     0   :  { %s128_s0 = inlined_call_operand.vmem [shape: f32[8,128], index: 0, kind: input, shape index: {}]   ;;  %s129_s1 = inlined_call_operand.vmem [shape: s32[8,1], index: 1, kind: input, shape index: {}]   ;;  %s130_s2 = inlined_call_operand.hbm [shape: f32[1,8,128], index: 2, kind: output, shape index: {}]  }
   0x1   :  { %v12_v0 = vld [vmem:[%s128_s0] sm:$0xff] }
   0x2   :  { %7 = vsyncpa [#allocation3], 0  ;;  %13 = vmax.xlane.f32.xlu0 %v12_v0  ;;  %v101_v1 = vmov 0   ;;  %v22_v2 = vld [vmem:[%s129_s1] sm:$0xff]  ;;  %v23_v6 = vlaneseq  ;;  %v102_v9 = vmov 0.0   ;;  %vm36_vm1 = vcmask 7168  }
   0x3   :  { %74 = vset.pattern.permute.xlu0 %v101_v1  ;;  %s103_s0 = smov [#allocation2]  }
   0x4   :  { %v24_v7 = vand.u32 127, %v23_v6  ;;  %v48_v27 = vshrl.u32 %v23_v6, 7  ;;  %s60_s1 = sshll.u32 %s103_s0, 4  ;;  %s61_s1 = int_to_ptr.vmem [resolvable:$true] %s60_s1 }
   0x5   :  { %s79_s14 = scalar_lea.vmem %s61_s1, 128  ;;  %p84_p1 = scmp.lt.s32.totalorder %s61_s1, %s61_s1 }
   0x6   :  { %vm49_vm2 = vcmp.eq.s32.totalorder %v48_v27, 0  ;;  %p80_p0 = scmp.ne.s32.totalorder %s61_s1, %s79_s14  ;;  %p85_p2 = scmp.lt.s32.totalorder %s79_s14, %s79_s14 }
   0x8   :  { %p86_p3 = por %p85_p2, %p84_p1 }
   0xa   :  { %p87_p4 = pnand %p86_p3, %p80_p0 }
  0x18   :  { %26 = vperm.xlu0 %74, %v22_v2  }
  0x8b   :  { %v14_v3 = vpop.xlane.xlu0 %13 }
  0x8c   :  { %v15_v4 = vsub.f32 %v12_v0, %v14_v3 }
  0x8e   :  { %v16_v5 = vmul.f32 1.442695, %v15_v4 }
  0x90   :  { %75 = vpow2.f32 %v16_v5 }
  0x93   :  { %v27_v8 = vpop.permute.xlu0 %26 }
  0x94   :  { %vm28_vm0 = vcmp.eq.s32.totalorder %v24_v7, %v27_v8 }
  0x95   :  { %v68_v10 = vsel %vm28_vm0, 1.0, %v102_v9 }
  0x96   :  { %v31_v12 = vmul.f32 %v68_v10, %v12_v0 }
  0x9d   :  { %v76_v11 = vpop.eup %75 }
  0x9e   :  { %18 = vadd.xlane.f32.xlu1 %v76_v11 }
  0xa2   :  { %32 = vadd.xlane.f32.xlu1 %v31_v12 }
 0x127   :  { %v19_v13 = vpop.xlane.xlu1 %18 }
 0x128   :  { %77 = vlog2.f32 %v19_v13 }
 0x12b   :  { %v33_v16 = vpop.xlane.xlu1 %32 }
 0x135   :  { %v78_v14 = vpop.eup %77 }
 0x136   :  { %v21_v15 = vmul.f32 0.6931472, %v78_v14 }
 0x138   :  { %v34_v17 = vadd.f32 %v21_v15, %v14_v3 }
 0x13a   :  { %v35_v18 = vsub.f32 %v34_v17, %v33_v16 }
 0x13c   :  { %v37_v19 = vsel %vm36_vm1, %v35_v18, 0.0 }
 0x13d   :  { %38 = vadd.xlane.f32.xlu1 %v37_v19 }
 0x1c6   :  { %v39_v20 = vpop.xlane.xlu1 %38 }
 0x1c7   :  { %v40_v21 = vrot.slane %v39_v20, 4 }
 0x1c9   :  { %v41_v22 = vadd.f32 %v40_v21, %v39_v20 }
 0x1cb   :  { %v42_v23 = vrot.slane %v41_v22, 2 }
 0x1cd   :  { %v43_v24 = vadd.f32 %v42_v23, %v41_v22 }
 0x1cf   :  { %v44_v25 = vrot.slane %v43_v24, 1 }
 0x1d1   :  { %v45_v26 = vadd.f32 %v44_v25, %v43_v24 }
 0x1d3   :  { %69 = vpush %v45_v26 }
 0x204   :  { %s70_s13 = spop %69 }
 0x205   :  { %v50_v28 = vstv %s70_s13 }
 0x206   :  { %v51_v29 = vsel %vm49_vm2, %v50_v28, 0.0 }
 0x207   :  { %53 = vst [vmem:[#allocation2] sm:$0xff] %v51_v29 }
 0x208   :  { %90 = shalt.err (!%p87_p4)
}
 0x209   :  { %63 = dma.vmem_to_hbm [thread:$0]  %s61_s1, 128, %s130_s2, [#allocation3]  }
 0x20a   :  { %99 = dma.done.wait [#allocation3], 128  }
 0x20b   :  { %100 = vsyncadd [#allocation3], 4294967168 }
 0x20c   :  { %67 = vsyncpa [#allocation3], 1 }

</bundles_post_ra>
